<compile_context>
chip_gen: v5e
topology: v5e:2x2
jax: 0.10.0
libtpu: 0.0.40
codegen_flags: <defaults>
</compile_context>

<pallas_src>
import jax
import jax.numpy as jnp
from jax import lax
from jax.experimental import pallas as pl
from jax.experimental.pallas import tpu as pltpu

_LANES = 128
_SUBLANES = 8
_MAX_TILE_ROWS = 8192              # 8192 x 128 f32 = 4 MiB per input block
_NUM_SPLITS = 2                    # v7x has 2 TensorCores; harmless elsewhere
_SMALL_N = 4096                    # below this, plain XLA beats a kernel launch
_VMEM_LIMIT_BYTES = 32 * 1024 * 1024


def _diff_sq(est, real, needs_cast):
    if needs_cast:
        est = est.astype(jnp.float32)
        real = real.astype(jnp.float32)
    d = est - real
    return d * d


def _make_single_block_kernel(inv_n, needs_cast):
    """Whole slab fits in one VMEM block: one pass, one XLU reduce."""

    def kernel(est_ref, real_ref, out_ref):
        d2 = _diff_sq(est_ref[...], real_ref[...], needs_cast)
        out_ref[0, 0] = jnp.sum(d2) * jnp.float32(inv_n)

    return kernel


def _make_gridded_kernel(needs_cast, tile_rows, tiles_per_split, total_rows,
                         mask_tail):
    """Streaming sum-of-squares; accumulates into the resident (8,128) out block."""

    def kernel(est_ref, real_ref, out_ref):
        t = pl.program_id(1)

        @pl.when(t == 0)
        def _init():
            out_ref[...] = jnp.zeros_like(out_ref)

        d2 = _diff_sq(est_ref[...], real_ref[...], needs_cast)

        if mask_tail:
            # Boundary / duplicated-overhang blocks contain unspecified rows:
            # mask on the *logical* global row index (unclamped tile index).
            c = pl.program_id(0)
            tile_idx = c * tiles_per_split + t
            row = (lax.broadcasted_iota(jnp.int32, (tile_rows, 1), 0)
                   + tile_idx * tile_rows)
            d2 = jnp.where(row < total_rows, d2, 0.0)

        # Pure-VALU sublane tree: (tile_rows,128) -> (8,128), no XLU in the hot loop.
        out_ref[...] += d2.reshape(tile_rows // _SUBLANES, _SUBLANES, _LANES).sum(axis=0)

    return kernel


def supervised_loss(estimated_cost, real_cost):
    """Pallas equivalent of F.mse_loss(estimated_cost, real_cost) (mean reduction)."""
    assert estimated_cost.shape == real_cost.shape, "shapes must match (like mse_loss)"
    n = estimated_cost.size
    assert n > 0

    out_dtype = jnp.promote_types(estimated_cost.dtype, real_cost.dtype)
    if not jnp.issubdtype(out_dtype, jnp.floating):
        out_dtype = jnp.float32

    # ---- small-N fast path (covers the production (batch, 1) shape) ----
    if n <= _SMALL_N:
        d = estimated_cost.astype(jnp.float32) - real_cost.astype(jnp.float32)
        return jnp.mean(d * d).astype(out_dtype)

    needs_cast = (estimated_cost.dtype != jnp.float32) or (real_cost.dtype != jnp.float32)
    inv_n = 1.0 / n

    # ---- lane-dense (rows, 128) view, minimal (<=127 element) padding ----
    if n % _LANES == 0:
        est2d = estimated_cost.reshape(-1, _LANES)
        real2d = real_cost.reshape(-1, _LANES)
    else:
        pad = _LANES - (n % _LANES)
        est2d = jnp.pad(estimated_cost.reshape(-1), (0, pad)).reshape(-1, _LANES)
        real2d = jnp.pad(real_cost.reshape(-1), (0, pad)).reshape(-1, _LANES)
    rows = est2d.shape[0]

    itemsize = est2d.dtype.itemsize + real2d.dtype.itemsize
    cost = pl.CostEstimate(flops=3 * n, transcendentals=0,
                           bytes_accessed=n * itemsize + 4)

    # ---- single-block path: the whole slab fits in one <=4 MiB VMEM block ----
    if rows <= _MAX_TILE_ROWS:
        kernel = _make_single_block_kernel(inv_n, needs_cast)
        out = pl.pallas_call(
            kernel,
            out_shape=jax.ShapeDtypeStruct((1, 1), jnp.float32),
            grid_spec=pltpu.PrefetchScalarGridSpec(
                num_scalar_prefetch=0,
                grid=(1,),
                in_specs=[
                    pl.BlockSpec((rows, _LANES), lambda i: (0, 0)),
                    pl.BlockSpec((rows, _LANES), lambda i: (0, 0)),
                ],
                out_specs=pl.BlockSpec(memory_space=pltpu.SMEM),
            ),
            compiler_params=pltpu.CompilerParams(
                dimension_semantics=("arbitrary",),
                vmem_limit_bytes=_VMEM_LIMIT_BYTES,
            ),
            cost_estimate=cost,
        )(est2d, real2d)
        return out[0, 0].astype(out_dtype)

    # ---- gridded, megacore-split streaming path ----
    tile_rows = _MAX_TILE_ROWS
    num_tiles = pl.cdiv(rows, tile_rows)
    tiles_per_split = pl.cdiv(num_tiles, _NUM_SPLITS)
    covered_tiles = _NUM_SPLITS * tiles_per_split
    mask_tail = covered_tiles * tile_rows > rows

    if covered_tiles > num_tiles:
        # Odd tile count: clamp the block index so the duplicated overhang
        # block stays in bounds; its contribution is zeroed by the row mask.
        def in_index(c, t):
            return (jnp.minimum(c * tiles_per_split + t, num_tiles - 1), 0)
    else:
        def in_index(c, t):
            return (c * tiles_per_split + t, 0)

    kernel = _make_gridded_kernel(needs_cast, tile_rows, tiles_per_split, rows,
                                  mask_tail)
    partial = pl.pallas_call(
        kernel,
        out_shape=jax.ShapeDtypeStruct((_NUM_SPLITS * _SUBLANES, _LANES),
                                       jnp.float32),
        grid_spec=pltpu.PrefetchScalarGridSpec(
            num_scalar_prefetch=0,
            grid=(_NUM_SPLITS, tiles_per_split),
            in_specs=[
                pl.BlockSpec((tile_rows, _LANES), in_index),
                pl.BlockSpec((tile_rows, _LANES), in_index),
            ],
            out_specs=pl.BlockSpec((_SUBLANES, _LANES), lambda c, t: (c, 0)),
        ),
        compiler_params=pltpu.CompilerParams(
            dimension_semantics=("parallel", "arbitrary"),
            vmem_limit_bytes=_VMEM_LIMIT_BYTES,
        ),
        cost_estimate=cost,
    )(est2d, real2d)

    # Tiny (2*8, 128) reduction + 1/N scale, fused by XLA.
    return (jnp.sum(partial) * jnp.float32(inv_n)).astype(out_dtype)


if __name__ == "__main__":
    key = jax.random.PRNGKey(0)
    k1, k2, k3, k4, k5, k6, k7, k8 = jax.random.split(key, 8)

    def ref_mse(a, b):
        return jnp.mean((a.astype(jnp.float32) - b.astype(jnp.float32)) ** 2)

    # 1) Production-like shape (batch, 1): small-N fast path.
    est = jax.random.normal(k1, (8, 1), dtype=jnp.float32)
    real = jax.random.normal(k2, (8, 1), dtype=jnp.float32)
    out = supervised_loss(est, real)
    jax.block_until_ready(out)
    assert jnp.allclose(out, ref_mse(est, real), rtol=1e-6, atol=1e-6), (out, ref_mse(est, real))

    # 2) Single-block Pallas path, lane-aligned (no padding): n = 48 * 128.
    est = jax.random.normal(k3, (48 * _LANES, 1), dtype=jnp.float32)
    real = jax.random.normal(k4, (48 * _LANES, 1), dtype=jnp.float32)
    out = supervised_loss(est, real)
    jax.block_until_ready(out)
    assert jnp.allclose(out, ref_mse(est, real), rtol=1e-5, atol=1e-6), (out, ref_mse(est, real))

    # 3) Single-block Pallas path, ragged size (sliver pad only): n = 5000.
    est = jax.random.normal(k5, (5000,), dtype=jnp.float32)
    real = jax.random.normal(k6, (5000,), dtype=jnp.float32)
    out = supervised_loss(est, real)
    jax.block_until_ready(out)
    assert jnp.allclose(out, ref_mse(est, real), rtol=1e-5, atol=1e-6), (out, ref_mse(est, real))

    # 4) Gridded megacore path, odd tile count (exercises the clamped
    #    index_map and the in-kernel tail-row mask): 3 tiles of 8192 rows.
    big_n = 2 * _MAX_TILE_ROWS * _LANES + 777
    est = jax.random.normal(k7, (big_n, 1), dtype=jnp.float32)
    real = jax.random.normal(k8, (big_n, 1), dtype=jnp.float32)
    out = supervised_loss(est, real)
    jax.block_until_ready(out)
    assert jnp.allclose(out, ref_mse(est, real), rtol=1e-4, atol=1e-6), (out, ref_mse(est, real))

    print("KERNEL_OK")
</pallas_src>

<mosaic_0001>
module attributes {stable_mosaic.version = 11 : i64} {
  func.func @kernel(%arg0: i32, %arg1: memref<48x128xf32, #tpu.memory_space<vmem>>, %arg2: memref<48x128xf32, #tpu.memory_space<vmem>>, %arg3: memref<1x1xf32, #tpu.memory_space<smem>>) attributes {dimension_semantics = [#tpu.dimension_semantics<arbitrary>], iteration_bounds = array<i64: 1>, scalar_prefetch = 0 : i64, scratch_operands = 0 : i64, tpu.core_type = #tpu.core_type<tc>, window_params = [{pipeline_mode = #tpu.pipeline_mode<synchronous>, transform_indices = @transform_0, window_bounds = array<i64: 48, 128>}, {pipeline_mode = #tpu.pipeline_mode<synchronous>, transform_indices = @transform_1, window_bounds = array<i64: 48, 128>}, {transform_indices = @transform_2, window_bounds = array<i64: 1, 1>}]} {
    %c0 = arith.constant 0 : index
    %c0_0 = arith.constant 0 : index
    %0 = vector.load %arg1[%c0, %c0_0] : memref<48x128xf32, #tpu.memory_space<vmem>>, vector<48x128xf32>
    %c0_1 = arith.constant 0 : index
    %c0_2 = arith.constant 0 : index
    %1 = vector.load %arg2[%c0_1, %c0_2] : memref<48x128xf32, #tpu.memory_space<vmem>>, vector<48x128xf32>
    %2 = arith.subf %0, %1 : vector<48x128xf32>
    %3 = arith.mulf %2, %2 : vector<48x128xf32>
    %4 = vector.shape_cast %3 : vector<48x128xf32> to vector<1x48x128xf32>
    %cst = arith.constant dense<0.000000e+00> : vector<1xf32>
    %5 = vector.multi_reduction <add>, %4, %cst [1, 2] : vector<1x48x128xf32> to vector<1xf32>
    %6 = vector.shape_cast %5 : vector<1xf32> to vector<1x1x1xf32>
    %7 = vector.extract %6[0, 0, 0] : f32 from vector<1x1x1xf32>
    %cst_3 = arith.constant 1.62760422E-4 : f32
    %8 = arith.mulf %7, %cst_3 : f32
    %c0_4 = arith.constant 0 : index
    %c0_5 = arith.constant 0 : index
    %9 = memref.load %arg3[%c0_4, %c0_5] : memref<1x1xf32, #tpu.memory_space<smem>>
    memref.store %8, %arg3[%c0_4, %c0_5] : memref<1x1xf32, #tpu.memory_space<smem>>
    return
  }
  func.func @transform_0(%arg0: i32) -> (i32, i32) {
    %c0_i32 = arith.constant 0 : i32
    %c0_i32_0 = arith.constant 0 : i32
    %c0_i32_1 = arith.constant 0 : i32
    return %c0_i32, %c0_i32_0 : i32, i32
  }
  func.func @transform_1(%arg0: i32) -> (i32, i32) {
    %c0_i32 = arith.constant 0 : i32
    %c0_i32_0 = arith.constant 0 : i32
    %c0_i32_1 = arith.constant 0 : i32
    return %c0_i32, %c0_i32_0 : i32, i32
  }
  func.func @transform_2(%arg0: i32) -> (i32, i32) {
    %c0_i32 = arith.constant 0 : i32
    %c0_i32_0 = arith.constant 0 : i32
    %c0_i32_1 = arith.constant 0 : i32
    return %c0_i32, %c0_i32_0 : i32, i32
  }
}

</mosaic_0001>

<bundles_post_ra>
// kernel: tpu_custom_call.1
= control target key start
LH: loop header
LB: loop body
LE: loop exit
PB: predicated region body
PF: predicated region fallthrough
CT: control target
= control target key end

     0   :  { %7 = vsyncpa [#allocation3], 0  ;;  %s204_s0 = inlined_call_operand.hbm [shape: f32[48,128], index: 0, kind: input, shape index: {}]   ;;  %s205_s1 = inlined_call_operand.hbm [shape: f32[48,128], index: 1, kind: input, shape index: {}]   ;;  %s206_s2 = inlined_call_operand.hbm [shape: f32[1,1], index: 2, kind: output, shape index: {}]  }
   0x1   :  { %8 = vsyncpa [#allocation6], 0 }
   0x2   :  { %9 = vsyncpa [#allocation4], 0  ;;  %s14_s11 = sshll.u32 %s204_s0, 4  ;;  %s175_s12 = smov [#allocation2]   ;;  %s15_s11 = int_to_ptr.hbm [resolvable:$true] %s14_s11 }
   0x3   :  { %s16_s13 = sshll.u32 %s175_s12, 4  ;;  %s27_s16 = sshll.u32 %s205_s1, 4  ;;  %s17_s13 = int_to_ptr.vmem [resolvable:$true] %s16_s13  ;;  %s28_s16 = int_to_ptr.hbm [resolvable:$true] %s27_s16 }
   0x4   :  { %s176_s17 = smov 128   ;;  %s177_s18 = smov 8  }
   0x5   :  { %22 = dma.hbm_to_vmem [thread:$0]  %s15_s11, 768, %s17_s13, [#allocation3], %s176_s17, %s176_s17, %s177_s18  }
   0x6   :  { %s178_s19 = smov [#allocation5]  }
   0x7   :  { %s29_s20 = sshll.u32 %s178_s19, 4  ;;  %s30_s20 = int_to_ptr.vmem [resolvable:$true] %s29_s20 }
   0x8   :  { %35 = dma.hbm_to_vmem [thread:$0]  %s28_s16, 768, %s30_s20, [#allocation6], %s176_s17, %s176_s17, %s177_s18  }
   0x9   :  { %169 = dma.done.wait [#allocation3], 768  }
   0xa   :  { %170 = vsyncadd [#allocation3], 4294966528 }
   0xb   :  { %171 = dma.done.wait [#allocation6], 768  }
   0xc   :  { %172 = vsyncadd [#allocation6], 4294966528  ;;  %v44_v0 = vld [vmem:[#allocation2] sm:$0xff]  ;;  %v45_v1 = vld [vmem:[#allocation2 + $0x8] sm:$0xff]  ;;  %s90_s21 = sshll.u32 %s206_s2, 4  ;;  %s179_s24 = smov [#allocation7]   ;;  %s91_s21 = int_to_ptr.hbm [resolvable:$true] %s90_s21 }
   0xd   :  { %v46_v2 = vld [vmem:[#allocation2 + $0x10] sm:$0xff]  ;;  %v47_v3 = vld [vmem:[#allocation2 + $0x18] sm:$0xff]  ;;  %v48_v4 = vld [vmem:[#allocation2 + $0x20] sm:$0xff] }
   0xe   :  { %v50_v5 = vld [vmem:[#allocation5] sm:$0xff]  ;;  %v51_v6 = vld [vmem:[#allocation5 + $0x8] sm:$0xff]  ;;  %v52_v7 = vld [vmem:[#allocation5 + $0x10] sm:$0xff] }
   0xf   :  { %v53_v8 = vld [vmem:[#allocation5 + $0x18] sm:$0xff]  ;;  %v54_v9 = vld [vmem:[#allocation5 + $0x20] sm:$0xff]  ;;  %v56_v10 = vsub.f32 %v44_v0, %v50_v5  ;;  %v57_v11 = vsub.f32 %v45_v1, %v51_v6  ;;  %v58_v12 = vsub.f32 %v46_v2, %v52_v7  ;;  %v55_v14 = vld [vmem:[#allocation5 + $0x28] sm:$0xff] }
  0x10   :  { %v49_v13 = vld [vmem:[#allocation2 + $0x28] sm:$0xff]  ;;  %v59_v15 = vsub.f32 %v47_v3, %v53_v8  ;;  %v60_v16 = vsub.f32 %v48_v4, %v54_v9 }
  0x11   :  { %v62_v17 = vmul.f32 %v56_v10, %v56_v10  ;;  %v63_v18 = vmul.f32 %v57_v11, %v57_v11  ;;  %v64_v19 = vmul.f32 %v58_v12, %v58_v12  ;;  %v61_v20 = vsub.f32 %v49_v13, %v55_v14 }
  0x12   :  { %v65_v21 = vmul.f32 %v59_v15, %v59_v15  ;;  %v66_v23 = vmul.f32 %v60_v16, %v60_v16 }
  0x13   :  { %v68_v22 = vadd.f32 %v63_v18, %v62_v17  ;;  %v67_v25 = vmul.f32 %v61_v20, %v61_v20 }
  0x15   :  { %v69_v24 = vadd.f32 %v68_v22, %v64_v19 }
  0x17   :  { %v70_v26 = vadd.f32 %v69_v24, %v65_v21 }
  0x19   :  { %v71_v27 = vadd.f32 %v70_v26, %v66_v23 }
  0x1b   :  { %v72_v28 = vadd.f32 %v71_v27, %v67_v25 }
  0x1d   :  { %73 = vadd.xlane.f32.xlu0 %v72_v28 }
  0x90   :  { %v74_v29 = vpop.xlane.xlu0 %73 }
  0x91   :  { %v75_v30 = vrot.slane %v74_v29, 4 }
  0x93   :  { %v76_v31 = vadd.f32 %v75_v30, %v74_v29 }
  0x95   :  { %v77_v32 = vrot.slane %v76_v31, 2 }
  0x97   :  { %v78_v33 = vadd.f32 %v77_v32, %v76_v31 }
  0x99   :  { %v79_v34 = vrot.slane %v78_v33, 1 }
  0x9b   :  { %v80_v35 = vadd.f32 %v79_v34, %v78_v33 }
  0x9d   :  { %102 = vpush %v80_v35 }
  0xce   :  { %s103_s22 = spop %102 }
  0xcf   :  { %s82_s23 = smul.f32 0.00016276042, %s103_s22 }
  0xd1   :  { %84 = sst [smem:[#allocation7]] %s82_s23 }
  0xd2   :  { %93 = dma.smem_to_hbm %s179_s24, 16, %s91_s21, [#allocation4]  }
  0xd3   :  { %173 = dma.done.wait [#allocation4], 16  }
  0xd4   :  { %174 = vsyncadd [#allocation4], 4294967280 }
  0xd5   :  { %98 = sfence }
  0xd6   :  { %99 = vsyncpa [#allocation3], 1 }
  0xd7   :  { %100 = vsyncpa [#allocation6], 1 }
  0xd8   :  { %101 = vsyncpa [#allocation4], 1 }

</bundles_post_ra>
